<compile_context>
chip_gen: v7x
topology: tpu7x:2x2x1
jax: 0.10.0
libtpu: 0.0.40
codegen_flags: <defaults>
</compile_context>

<pallas_src>
import jax
import jax.numpy as jnp
from jax.experimental import pallas as pl
from jax.experimental.pallas import tpu as pltpu


def _round_up(x, m):
    return ((x + m - 1) // m) * m


def _vmem_capacity_bytes():
    """Per-core VMEM capacity; generation-aware fallback if unqueryable."""
    try:
        info = pltpu.get_tpu_info()
        cap = getattr(info, "vmem_capacity_bytes", None)
        if cap:
            return int(cap)
    except Exception:
        pass
    try:
        kind = jax.devices()[0].device_kind.lower()
        if "v5" in kind or "v6" in kind:
            return 128 * 1024 * 1024          # v5e / v6e
    except Exception:
        pass
    return 64 * 1024 * 1024                   # v7x per-TensorCore VMEM


def _pick_tiles(batch, embed_dim, x_itemsize, vmem_cap):
    """Choose (tile_b, tile_d) so the double-buffered x block fits VMEM."""
    MAX_ROWS = 1024                  # 512-1024 rows sit at the HBM roofline knee
    budget = int(0.6 * vmem_cap)     # x double-buffer budget; little else resident

    # Row tile: aim for an even number (>= 4) of batch blocks so both v7x
    # TensorCores get pipelined, balanced work; tiny batches get one block.
    b8 = _round_up(batch, 8)
    if b8 >= 32:
        tile_b = min(MAX_ROWS, _round_up(pl.cdiv(batch, 4), 8))
    else:
        tile_b = min(MAX_ROWS, b8)

    def fits(tb, td):
        return 2 * tb * td * x_itemsize <= budget

    # Lane (D) tile: full D if it fits, else the largest 128-multiple divisor
    # of D that fits (accumulated over the second, "arbitrary" grid axis).
    if fits(tile_b, embed_dim):
        tile_d = embed_dim
    elif embed_dim % 128 == 0:
        n128 = embed_dim // 128
        q_max = max(1, budget // (2 * tile_b * x_itemsize * 128))
        tile_d = embed_dim
        for cand in range(min(n128, q_max), 0, -1):
            if n128 % cand == 0:
                tile_d = 128 * cand
                break
    else:
        tile_d = embed_dim

    if not fits(tile_b, tile_d):
        # Last resort (huge D with no usable 128-multiple divisor): shrink rows.
        # TODO(synk): add an in-kernel lane mask so the D axis can be split
        # even when embed_dim has no 128-multiple divisor.
        rows = budget // (2 * tile_d * x_itemsize)
        tile_b = max(8, (rows // 8) * 8)

    # Prefer an even number of batch blocks when there is more than one.
    nb = pl.cdiv(batch, tile_b)
    if nb > 1 and nb % 2 == 1:
        tile_b2 = _round_up(pl.cdiv(batch, nb + 1), 8)
        if tile_b2 >= 8 and pl.cdiv(batch, tile_b2) % 2 == 0:
            tile_b = tile_b2

    return tile_b, tile_d


def _make_kernel(use_mxu):
    def kernel(x_ref, w_ref, b_ref, o_ref, acc_ref):
        k = pl.program_id(1)

        @pl.when(k == 0)
        def _init():
            acc_ref[...] = jnp.zeros_like(acc_ref)

        x = x_ref[...].astype(jnp.float32)               # (tile_b, tile_d)
        if use_mxu:
            # Small D: ride the otherwise-idle MXU instead of saturating the
            # 2 XLUs with per-row cross-lane reduces.
            w_col = w_ref[...].astype(jnp.float32)       # (tile_d, 1)
            acc_ref[...] += jnp.dot(
                x, w_col,
                precision=jax.lax.Precision.HIGHEST,
                preferred_element_type=jnp.float32)
        else:
            w_row = w_ref[...].astype(jnp.float32)       # (1, tile_d) lane-dense
            acc_ref[...] += jnp.sum(x * w_row, axis=-1, keepdims=True)

        @pl.when(k == pl.num_programs(1) - 1)
        def _finalize():
            o_ref[...] = (acc_ref[...] + b_ref[0, 0]).astype(o_ref.dtype)

    return kernel


def linear_critic(x, weight, bias, *, tile_b=None, tile_d=None):
    """y = x @ weight.T + bias, matching nn.Linear(embed_dim, 1).

    x:      (..., D) float32 or bfloat16
    weight: (1, D)   (PyTorch layout)
    bias:   (1,)
    Returns (..., 1) float32.
    """
    *lead, D = x.shape
    assert weight.shape == (1, D)
    x2 = x.reshape(-1, D)
    B = x2.shape[0]

    x_itemsize = jnp.dtype(x2.dtype).itemsize
    vmem_cap = _vmem_capacity_bytes()
    auto_tb, auto_td = _pick_tiles(B, D, x_itemsize, vmem_cap)
    if tile_b is None:
        tile_b = auto_tb
    if tile_d is None:
        tile_d = auto_td
    tile_b = max(8, _round_up(int(tile_b), 8))
    tile_d = int(tile_d)

    use_mxu = (D <= 512) and (tile_d == D)

    w_f32 = weight.astype(jnp.float32)
    if use_mxu:
        w_in = w_f32.reshape(D, 1)                       # (K, N) column for the MXU
        w_spec = pl.BlockSpec((tile_d, 1), lambda i, k: (k, 0))
    else:
        w_in = w_f32.reshape(1, D)                       # lane-dense row for the VPU
        w_spec = pl.BlockSpec((1, tile_d), lambda i, k: (0, k))
    b_sm = bias.reshape(1, 1).astype(jnp.float32)        # scalar, lives in SMEM

    nb = pl.cdiv(B, tile_b)                              # partial last block: no pad copy
    nd = pl.cdiv(D, tile_d)
    grid = (nb, nd)

    # Scoped VMEM limit: generous headroom over the estimated footprint.
    if use_mxu:
        w_block = _round_up(tile_d, 8) * 128 * 4
    else:
        w_block = 8 * _round_up(tile_d, 128) * 4
    needed = (2 * tile_b * _round_up(tile_d, 128) * x_itemsize   # x double buffer
              + 2 * w_block                                      # weight double buffer
              + 3 * tile_b * 128 * 4                             # out double buffer + acc
              + (2 << 20))
    vmem_limit = int(min(vmem_cap, max(needed + (16 << 20), 32 << 20)))

    cost = pl.CostEstimate(
        flops=2 * B * D,
        transcendentals=0,
        bytes_accessed=B * D * x_itemsize + D * 4 + B * 4 + 4,
    )

    out = pl.pallas_call(
        _make_kernel(use_mxu),
        out_shape=jax.ShapeDtypeStruct((B, 1), jnp.float32),
        grid_spec=pltpu.PrefetchScalarGridSpec(
            num_scalar_prefetch=0,
            grid=grid,
            in_specs=[
                pl.BlockSpec((tile_b, tile_d), lambda i, k: (i, k)),   # x tile (streamed)
                w_spec,                                                # weight block
                pl.BlockSpec(memory_space=pltpu.MemorySpace.SMEM),     # bias scalar
            ],
            out_specs=pl.BlockSpec((tile_b, 1), lambda i, k: (i, 0)),
            scratch_shapes=[pltpu.VMEM((tile_b, 1), jnp.float32)],     # per-row f32 acc
        ),
        compiler_params=pltpu.CompilerParams(
            dimension_semantics=("parallel", "arbitrary"),
            vmem_limit_bytes=vmem_limit,
        ),
        cost_estimate=cost,
    )(x2, w_in, b_sm)

    # TODO(synk): for D < 128, repack several rows per 128-lane vreg in the
    # wrapper (and make the output lane-dense) to remove the lane-padding
    # waste in DMA/VMEM; correctness does not depend on it.
    return out.reshape(*lead, 1)


if __name__ == "__main__":
    batch, embed_dim = 8, 32

    key = jax.random.PRNGKey(0)
    kx, kw, kb = jax.random.split(key, 3)

    # Deterministic synthetic params (shapes from nn.Linear(embed_dim, 1)):
    # weight (1, embed_dim), bias (1,). PyTorch init is U(-1/sqrt(D), 1/sqrt(D)).
    bound = 1.0 / jnp.sqrt(jnp.float32(embed_dim))
    weight = jax.random.uniform(kw, (1, embed_dim), jnp.float32, -bound, bound)
    bias = jax.random.uniform(kb, (1,), jnp.float32, -bound, bound)
    x = jax.random.normal(kx, (batch, embed_dim), jnp.float32)

    out = linear_critic(x, weight, bias)
    out = jax.block_until_ready(out)

    # Reference check against plain JAX (same math as torch's x @ W.T + b).
    ref = x @ weight.T + bias
    assert out.shape == (batch, 1)
    assert jnp.allclose(out, ref, atol=1e-5, rtol=1e-5), float(jnp.max(jnp.abs(out - ref)))

    print("KERNEL_OK")
</pallas_src>

<mosaic_0001>
module attributes {stable_mosaic.version = 11 : i64} {
  func.func @kernel(%arg0: i32, %arg1: i32, %arg2: memref<8x32xf32, #tpu.memory_space<vmem>>, %arg3: memref<32x1xf32, #tpu.memory_space<vmem>>, %arg4: memref<1x1xf32, #tpu.memory_space<smem>>, %arg5: memref<8x1xf32, #tpu.memory_space<vmem>>, %arg6: memref<8x1xf32, #tpu.memory_space<vmem>>) attributes {dimension_semantics = [#tpu.dimension_semantics<parallel>, #tpu.dimension_semantics<arbitrary>], iteration_bounds = array<i64: 1, 1>, scalar_prefetch = 0 : i64, scratch_operands = 1 : i64, tpu.core_type = #tpu.core_type<tc>, window_params = [{transform_indices = @transform_0, window_bounds = array<i64: 8, 32>}, {transform_indices = @transform_1, window_bounds = array<i64: 32, 1>}, {transform_indices = @transform_2, window_bounds = array<i64: 1, 1>}, {transform_indices = @transform_3, window_bounds = array<i64: 8, 1>}]} {
    %c0_i32 = arith.constant 0 : i32
    %0 = arith.cmpi eq, %arg1, %c0_i32 : i32
    %1 = arith.extui %0 : i1 to i32
    %c0_i32_0 = arith.constant 0 : i32
    %2 = arith.cmpi ne, %1, %c0_i32_0 : i32
    scf.if %2 {
      %cst_10 = arith.constant 0.000000e+00 : f32
      %12 = vector.broadcast %cst_10 : f32 to vector<8x1xf32>
      %c0_11 = arith.constant 0 : index
      %c0_12 = arith.constant 0 : index
      %13 = vector.load %arg6[%c0_11, %c0_12] : memref<8x1xf32, #tpu.memory_space<vmem>>, vector<8x1xf32>
      tpu.vector_store %arg6[%c0_11, %c0_12], %12 {strides = array<i32>} : memref<8x1xf32, #tpu.memory_space<vmem>>, vector<8x1xf32>,
    } else {
    }
    %c0 = arith.constant 0 : index
    %c0_1 = arith.constant 0 : index
    %3 = vector.load %arg2[%c0, %c0_1] : memref<8x32xf32, #tpu.memory_space<vmem>>, vector<8x32xf32>
    %c0_2 = arith.constant 0 : index
    %c0_3 = arith.constant 0 : index
    %4 = vector.load %arg3[%c0_2, %c0_3] : memref<32x1xf32, #tpu.memory_space<vmem>>, vector<32x1xf32>
    %c0_4 = arith.constant 0 : index
    %c0_5 = arith.constant 0 : index
    %5 = vector.load %arg6[%c0_4, %c0_5] : memref<8x1xf32, #tpu.memory_space<vmem>>, vector<8x1xf32>
    %cst = arith.constant dense<0.000000e+00> : vector<8x1xf32>
    %6 = tpu.matmul %3, %4, %cst {dimension_numbers = #tpu.dot_dimension_numbers<[1], [0], [0], [1], [0, 0, 1, 1], [], []>, precision = #tpu.contract_precision<fp32>} : vector<8x32xf32>, vector<32x1xf32>, vector<8x1xf32> -> vector<8x1xf32>
    %7 = arith.addf %5, %6 : vector<8x1xf32>
    %c0_6 = arith.constant 0 : index
    %c0_7 = arith.constant 0 : index
    %8 = vector.load %arg6[%c0_6, %c0_7] : memref<8x1xf32, #tpu.memory_space<vmem>>, vector<8x1xf32>
    tpu.vector_store %arg6[%c0_6, %c0_7], %7 {strides = array<i32>} : memref<8x1xf32, #tpu.memory_space<vmem>>, vector<8x1xf32>,
    %c0_i32_8 = arith.constant 0 : i32
    %9 = arith.cmpi eq, %arg1, %c0_i32_8 : i32
    %10 = arith.extui %9 : i1 to i32
    %c0_i32_9 = arith.constant 0 : i32
    %11 = arith.cmpi ne, %10, %c0_i32_9 : i32
    scf.if %11 {
      %c0_10 = arith.constant 0 : index
      %c0_11 = arith.constant 0 : index
      %12 = vector.load %arg6[%c0_10, %c0_11] : memref<8x1xf32, #tpu.memory_space<vmem>>, vector<8x1xf32>
      %c0_12 = arith.constant 0 : index
      %c0_13 = arith.constant 0 : index
      %13 = memref.load %arg4[%c0_12, %c0_13] : memref<1x1xf32, #tpu.memory_space<smem>>
      %14 = vector.broadcast %13 : f32 to vector<8x1xf32>
      %15 = arith.addf %12, %14 : vector<8x1xf32>
      %c0_14 = arith.constant 0 : index
      %c0_15 = arith.constant 0 : index
      %16 = vector.load %arg5[%c0_14, %c0_15] : memref<8x1xf32, #tpu.memory_space<vmem>>, vector<8x1xf32>
      tpu.vector_store %arg5[%c0_14, %c0_15], %15 {strides = array<i32>} : memref<8x1xf32, #tpu.memory_space<vmem>>, vector<8x1xf32>,
    } else {
    }
    return
  }
  func.func @transform_0(%arg0: i32, %arg1: i32) -> (i32, i32) {
    %c0_i32 = arith.constant 0 : i32
    return %arg0, %arg1 : i32, i32
  }
  func.func @transform_1(%arg0: i32, %arg1: i32) -> (i32, i32) {
    %c0_i32 = arith.constant 0 : i32
    %c0_i32_0 = arith.constant 0 : i32
    return %arg1, %c0_i32 : i32, i32
  }
  func.func @transform_2(%arg0: i32, %arg1: i32) -> (i32, i32) {
    %c0_i32 = arith.constant 0 : i32
    %c0_i32_0 = arith.constant 0 : i32
    %c0_i32_1 = arith.constant 0 : i32
    return %c0_i32, %c0_i32_0 : i32, i32
  }
  func.func @transform_3(%arg0: i32, %arg1: i32) -> (i32, i32) {
    %c0_i32 = arith.constant 0 : i32
    %c0_i32_0 = arith.constant 0 : i32
    return %arg0, %c0_i32 : i32, i32
  }
}

</mosaic_0001>

<bundles_post_ra>
// kernel: tpu_custom_call.1
= control target key start
LH: loop header
LB: loop body
LE: loop exit
PB: predicated region body
PF: predicated region fallthrough
CT: control target
= control target key end

     0   :  { %vm27_vm0 = vcmask 261120   ;;  %v666_v0 = vmov 0.0|0.0   ;;  %vm667_vm1 = vmmov 0   ;;  %v668_v8 = vmov 0.0   ;;  %s739_s1 = inlined_call_operand.vmem [shape: f32[32,1], index: 1, kind: input, shape index: {}]   ;;  %s740_s0 = inlined_call_operand.vmem [shape: f32[8,32], index: 0, kind: input, shape index: {}]   ;;  %s741_s2 = inlined_call_operand.<no memory space> [shape: f32[1,1], index: 2, kind: input, shape index: {}]   ;;  %s742_s3 = inlined_call_operand.vmem [shape: f32[8,1], index: 3, kind: output, shape index: {}]  }
   0x1   :  { %627 = vmatprep.subr.bf16.mxu0 %v666_v0  ;;  %v22_v1 = vld [vmem:[%s739_s1] sm:$0xff]  ;;  %v23_v2 = vld [vmem:[%s739_s1 + $0x8] sm:$0xff]  ;;  %v24_v3 = vld [vmem:[%s739_s1 + $0x10] sm:$0xff]  ;;  %633 = vmatprep.subr.bf16.mxu1 %v666_v0  ;;  %vm19_vm2 = vcmask 7168   ;;  %v524_v60 = vstv %s741_s2 }
   0x2   :  { %v32_v4 = vand.u32 4294901760, %v22_v1  ;;  %v35_v5 = vand.u32 4294901760, %v23_v2  ;;  %v25_v6 = vld [vmem:[%s739_s1 + $0x18] sm:$0xff]  ;;  %v38_v7 = vand.u32 4294901760, %v24_v3  ;;  %569 = vmatprep.mubr.msk.f32.mxu0 %vm667_vm1, %v668_v8  ;;  %v21_v9 = vld [vmem:[%s740_s0] sm:$0xff]  ;;  %580 = vmatprep.mubr.msk.f32.mxu1 %vm667_vm1, %v668_v8  ;;  %20 = vst.msk [vmem:[#allocation2] sm:$0xff] %vm19_vm2, %v668_v8 }
   0x3   :  { %v41_v10 = vand.u32 4294901760, %v25_v6  ;;  %v29_v11 = vsel %vm27_vm0, %v21_v9, 0 }
   0x4   :  { %v628_v12 = vpack.c.bf16 %v35_v5, %v32_v4  ;;  %v112_v13 = vsub.f32 %v22_v1, %v32_v4  ;;  %v119_v14 = vsub.f32 %v23_v2, %v35_v5  ;;  %v126_v15 = vsub.f32 %v24_v3, %v38_v7 }
   0x5   :  { %v133_v16 = vsub.f32 %v25_v6, %v41_v10  ;;  %v100_v17 = vand.u32 4294901760, %v29_v11  ;;  %v631_v18 = vpack.c.bf16 %v41_v10, %v38_v7 }
   0x6   :  { %629 = vmatpush3.bf16.msra.mxu0 %v628_v12  ;;  %v113_v19 = vand.u32 4294901760, %v112_v13  ;;  %v120_v20 = vand.u32 4294901760, %v119_v14  ;;  %v127_v21 = vand.u32 4294901760, %v126_v15  ;;  %v640_v35 = vpack.c.bf16 %v119_v14, %v112_v13 }
   0x7   :  { %630 = vmatprep.subr.bf16.mxu0 %v666_v0  ;;  %v101_v22 = vsub.f32 %v29_v11, %v100_v17  ;;  %v134_v23 = vand.u32 4294901760, %v133_v16  ;;  %v643_v38 = vpack.c.bf16 %v133_v16, %v126_v15 }
   0x8   :  { %v114_v24 = vsub.f32 %v112_v13, %v113_v19  ;;  %v121_v25 = vsub.f32 %v119_v14, %v120_v20  ;;  %v128_v26 = vsub.f32 %v126_v15, %v127_v21  ;;  %v652_v39 = vpack.c.bf16 %v120_v20, %v113_v19 }
   0x9   :  { %v102_v27 = vand.u32 4294901760, %v101_v22  ;;  %v135_v28 = vsub.f32 %v133_v16, %v134_v23  ;;  %v655_v40 = vpack.c.bf16 %v134_v23, %v127_v21  ;;  %v26_v55 = vld [vmem:[#allocation2] sm:$0xff] }
   0xa   :  { %632 = vmatpush3.bf16.msra.mxu0 %v631_v18  ;;  %v115_v29 = vand.u32 4294901760, %v114_v24  ;;  %v122_v30 = vand.u32 4294901760, %v121_v25  ;;  %v129_v31 = vand.u32 4294901760, %v128_v26 }
   0xb   :  { %639 = vmatprep.subr.bf16.mxu0 %v666_v0  ;;  %v103_v32 = vsub.f32 %v101_v22, %v102_v27  ;;  %v136_v33 = vand.u32 4294901760, %v135_v28 }
   0xc   :  { %v634_v34 = vpack.c.bf16 %v122_v30, %v115_v29 }
   0xd   :  { %v104_v36 = vand.u32 4294901760, %v103_v32  ;;  %v637_v37 = vpack.c.bf16 %v136_v33, %v129_v31 }
   0xe   :  { %635 = vmatpush3.bf16.msra.mxu1 %v634_v34 }
   0xf   :  { %570 = vmatmul.mubr.f32.vlgmr.msra.gmra.mrb[0].mxu0 %v104_v36  ;;  %636 = vmatprep.subr.bf16.mxu1 %v666_v0 }
  0x10   :  { %641 = vmatpush3.bf16.msra.mxu0 %v640_v35  ;;  %591 = vmatprep.mubr.msk.f32.mxu0 %vm667_vm1, %v668_v8 }
  0x11   :  { %642 = vmatprep.subr.bf16.mxu0 %v666_v0 }
  0x12   :  { %638 = vmatpush3.bf16.msra.mxu1 %v637_v37 }
  0x13   :  { %645 = vmatprep.subr.bf16.mxu1 %v666_v0 }
  0x14   :  { %644 = vmatpush3.bf16.msra.mxu0 %v643_v38 }
  0x15   :  { %581 = vmatmul.mubr.f32.vlgmr.msra.gmra.mrb[0].mxu1 %v100_v17  ;;  %651 = vmatprep.subr.bf16.mxu0 %v666_v0 }
  0x16   :  { %647 = vmatpush3.bf16.msra.mxu1 %v628_v12  ;;  %602 = vmatprep.mubr.msk.f32.mxu1 %vm667_vm1, %v668_v8 }
  0x17   :  { %592 = vmatmul.mubr.f32.vlgmr.msra.gmra.mrb[2].mxu0 %v101_v22  ;;  %648 = vmatprep.subr.bf16.mxu1 %v666_v0 }
  0x18   :  { %653 = vmatpush3.bf16.msra.mxu0 %v652_v39  ;;  %613 = vmatprep.mubr.msk.f32.mxu0 %vm667_vm1, %v668_v8 }
  0x19   :  { %654 = vmatprep.subr.bf16.mxu0 %v666_v0 }
  0x1a   :  { %650 = vmatpush3.bf16.msra.mxu1 %v631_v18 }
  0x1b   :  { %657 = vmatprep.subr.bf16.mxu1 %v666_v0 }
  0x1c   :  { %656 = vmatpush3.bf16.msra.mxu0 %v655_v40 }
  0x1d   :  { %603 = vmatmul.mubr.f32.vlgmr.msra.gmra.mrb[2].mxu1 %v102_v27 }
  0x1e   :  { %659 = vmatpush3.bf16.msra.mxu1 %v628_v12  ;;  %624 = vmatprep.mubr.msk.f32.mxu1 %vm667_vm1, %v668_v8 }
  0x1f   :  { %614 = vmatmul.mubr.f32.vlgmr.msra.gmra.mrb[4].mxu0 %v100_v17  ;;  %660 = vmatprep.subr.bf16.mxu1 %v666_v0 }
  0x22   :  { %662 = vmatpush3.bf16.msra.mxu1 %v631_v18 }
  0x25   :  { %625 = vmatmul.mubr.f32.vlgmr.msra.gmra.mrb[4].mxu1 %v100_v17 }
  0xe2   :  { %v106_v41 = vpop.f32.mrb[0].mxu0 }
  0xe3   :  { %v571_v42 = vpop.f32.mrb[1].mxu0 }
  0xe8   :  { %v197_v43 = vpop.f32.mrb[0].mxu1 }
  0xe9   :  { %v198_v44 = vadd.f32 %v197_v43, %v106_v41  ;;  %v582_v45 = vpop.f32.mrb[1].mxu1 }
  0xea   :  { %v277_v46 = vpop.f32.mrb[2].mxu0 }
  0xeb   :  { %v278_v47 = vadd.f32 %v277_v46, %v198_v44  ;;  %v593_v48 = vpop.f32.mrb[3].mxu0 }
  0xf0   :  { %v354_v49 = vpop.f32.mrb[2].mxu1 }
  0xf1   :  { %v355_v50 = vadd.f32 %v354_v49, %v278_v47  ;;  %v604_v51 = vpop.f32.mrb[3].mxu1 }
  0xf2   :  { %v437_v52 = vpop.f32.mrb[4].mxu0 }
  0xf3   :  { %v438_v53 = vadd.f32 %v437_v52, %v355_v50  ;;  %v615_v54 = vpop.f32.mrb[5].mxu0 }
  0xf8   :  { %v512_v56 = vpop.f32.mrb[4].mxu1 }
  0xf9   :  { %v513_v57 = vadd.f32 %v512_v56, %v438_v53  ;;  %v626_v58 = vpop.f32.mrb[5].mxu1 }
  0xfb   :  { %v516_v59 = vadd.f32 %v513_v57, %v26_v55 }
  0xfd   :  { %518 = vst.msk [vmem:[#allocation2] sm:$0xff] %vm19_vm2, %v516_v59 }
 0x104   :  { %v522_v61 = vld [vmem:[#allocation2] sm:$0xff] }
 0x105   :  { %v525_v62 = vadd.f32 %v524_v60, %v522_v61 }
 0x107   :  { %526 = vst.msk [vmem:[%s742_s3] sm:$0xff] %vm19_vm2, %v525_v62 }

</bundles_post_ra>
